<compile_context>
chip_gen: v7x
topology: tpu7x:2x2x1
jax: 0.10.0
libtpu: 0.0.40
codegen_flags: <defaults>
</compile_context>

<pallas_src>
import functools

import numpy as np
import jax
import jax.numpy as jnp
from jax.experimental import pallas as pl
from jax.experimental.pallas import tpu as pltpu

# ----------------- deterministic "module" parameters (from __init__) ----------
FILTER_LENGTH = 16
HOP_LENGTH = 4
WIN_LENGTH = 16
CUTOFF = FILTER_LENGTH // 2 + 1          # 9
PAD_AMOUNT = FILTER_LENGTH // 2          # 8
SCALE = FILTER_LENGTH / HOP_LENGTH
RATIO = FILTER_LENGTH // HOP_LENGTH      # 4 overlapping hops per frame


def _hann_periodic(m):
    n = np.arange(m)
    return 0.5 - 0.5 * np.cos(2.0 * np.pi * n / m)   # get_window('hann', m, fftbins=True)


def _build_bases():
    fourier = np.fft.fft(np.eye(FILTER_LENGTH))
    fb = np.vstack([np.real(fourier[:CUTOFF, :]),
                    np.imag(fourier[:CUTOFF, :])])                          # (2c, N)
    win = _hann_periodic(WIN_LENGTH)                                        # pad_center no-op (win_length == N)
    fwd = (fb * win[None, :]).astype(np.float32)                            # forward_basis  (2c, N)
    inv = (np.linalg.pinv(SCALE * fb).T * win[None, :]).astype(np.float32)  # inverse_basis (2c, N)
    return fwd, inv, win.astype(np.float32)


FWD_BASIS, INV_BASIS, FFT_WINDOW = _build_bases()


def _window_sumsquare(n_frames):
    n = FILTER_LENGTH + HOP_LENGTH * (n_frames - 1)
    x = np.zeros(n, dtype=np.float32)
    win_sq = FFT_WINDOW.astype(np.float32) ** 2      # librosa normalize(norm=None) is identity
    for i in range(n_frames):
        s = i * HOP_LENGTH
        x[s:min(n, s + FILTER_LENGTH)] += win_sq[:max(0, min(FILTER_LENGTH, n - s))]
    return x


# --------------------------------- fused kernel --------------------------------
def _stft_fused_kernel(xd_ref, fb_ref, ibt_ref, wn_ref,
                       spec_ref, mag_ref, yd_ref, *, n_frames):
    nf = n_frames
    md = xd_ref[0]                                   # (nf+RATIO-1, HOP); md[g, b] = padded[g*HOP + b]

    # frames[f, a*HOP + b] = padded[f*HOP + a*HOP + b] = md[f + a, b]  -> 4 sublane-shifted slices.
    frames = jnp.concatenate([md[a:a + nf, :] for a in range(RATIO)], axis=1)       # (nf, 16)

    # forward conv1d(stride=hop): spectrum in lane-dense (2*cutoff, nf) layout.
    spec = jnp.dot(fb_ref[...], frames.T, preferred_element_type=jnp.float32)       # (18, nf)
    spec_ref[0] = spec
    re = spec[:CUTOFF, :]
    im = spec[CUTOFF:, :]
    mag_ref[0] = jnp.sqrt(re * re + im * im)

    # inverse conv_transpose1d: recombine == [real; imag] == spec (phase shortcut),
    # contrib[k, f] = sum_c inverse_basis[c, k] * spec[c, f].
    contrib = jnp.dot(ibt_ref[...], spec, preferred_element_type=jnp.float32)       # (16, nf)

    # overlap-add on the hop-deinterleaved grid: y[g*HOP + b] = sum_a contrib[a*HOP + b, g - a]
    acc = jnp.zeros((HOP_LENGTH, nf + RATIO - 1), jnp.float32)
    for a in range(RATIO):                           # 4 shifted VPU adds (static, tiny unroll)
        chunk = contrib[a * HOP_LENGTH:(a + 1) * HOP_LENGTH, :]                     # (HOP, nf)
        parts = []
        if a:
            parts.append(jnp.zeros((HOP_LENGTH, a), jnp.float32))
        parts.append(chunk)
        if RATIO - 1 - a:
            parts.append(jnp.zeros((HOP_LENGTH, RATIO - 1 - a), jnp.float32))
        acc = acc + jnp.concatenate(parts, axis=1)

    # window_sumsquare normalisation (scale folded in) applied in-kernel.
    yd_ref[0] = acc * wn_ref[...]


# ------------------------------- wrapper ---------------------------------------
@jax.jit
def stft_forward(x):
    """Pallas equivalent of STFT.forward: returns (reconstruction, magnitude, phase)."""
    B, num_samples = x.shape
    padded = jnp.pad(x, ((0, 0), (PAD_AMOUNT, PAD_AMOUNT)), mode="reflect")
    nf = (padded.shape[1] - FILTER_LENGTH) // HOP_LENGTH + 1
    n_total = FILTER_LENGTH + HOP_LENGTH * (nf - 1)          # == HOP_LENGTH * (nf + RATIO - 1)
    ncols = nf + RATIO - 1

    # hop-deinterleaved waveform (1x HBM traffic): xd[b, g, k] = padded[b, g*HOP + k]
    xd = padded[:, :n_total].reshape(B, ncols, HOP_LENGTH)

    fb = jnp.asarray(FWD_BASIS)                                           # (2c, N) [real; imag]
    ibt = jnp.asarray(np.ascontiguousarray(INV_BASIS.T))                  # (N, 2c)

    wsum = _window_sumsquare(nf)
    tiny = np.finfo(np.float32).tiny
    wnorm = (np.where(wsum > tiny, 1.0 / wsum, 1.0) * SCALE).astype(np.float32)      # (n_total,)
    wnd = jnp.asarray(np.ascontiguousarray(wnorm.reshape(ncols, HOP_LENGTH).T))      # (HOP, ncols)

    spec, mag, yd = pl.pallas_call(
        functools.partial(_stft_fused_kernel, n_frames=nf),
        out_shape=(jax.ShapeDtypeStruct((B, 2 * CUTOFF, nf), jnp.float32),
                   jax.ShapeDtypeStruct((B, CUTOFF, nf), jnp.float32),
                   jax.ShapeDtypeStruct((B, HOP_LENGTH, ncols), jnp.float32)),
        grid=(B,),
        in_specs=[pl.BlockSpec((1, ncols, HOP_LENGTH), lambda b: (b, 0, 0)),
                  pl.BlockSpec((2 * CUTOFF, FILTER_LENGTH), lambda b: (0, 0)),
                  pl.BlockSpec((FILTER_LENGTH, 2 * CUTOFF), lambda b: (0, 0)),
                  pl.BlockSpec((HOP_LENGTH, ncols), lambda b: (0, 0))],
        out_specs=(pl.BlockSpec((1, 2 * CUTOFF, nf), lambda b: (b, 0, 0)),
                   pl.BlockSpec((1, CUTOFF, nf), lambda b: (b, 0, 0)),
                   pl.BlockSpec((1, HOP_LENGTH, ncols), lambda b: (b, 0, 0))),
        compiler_params=pltpu.CompilerParams(dimension_semantics=("parallel",)),
    )(xd, fb, ibt, wnd)

    real = spec[:, :CUTOFF, :]
    imag = spec[:, CUTOFF:, :]
    # TODO(synk): atan2 lowering on Mosaic is not guaranteed -> phase (reporting only) stays in XLA glue.
    phase = jnp.arctan2(imag, real)                          # (B, cutoff, n_frames) torch layout
    magnitude = mag                                          # (B, cutoff, n_frames) torch layout

    y = jnp.transpose(yd, (0, 2, 1)).reshape(B, n_total)     # re-interleave overlap-add result
    recon = y[:, PAD_AMOUNT:PAD_AMOUNT + num_samples]
    return recon, magnitude, phase


# ------------------------------ pure-JAX reference -----------------------------
def reference_forward(x):
    B, num_samples = x.shape
    padded = jnp.pad(x, ((0, 0), (PAD_AMOUNT, PAD_AMOUNT)), mode="reflect")
    nf = (padded.shape[1] - FILTER_LENGTH) // HOP_LENGTH + 1
    idx = np.arange(nf)[:, None] * HOP_LENGTH + np.arange(FILTER_LENGTH)[None, :]
    frames = padded[:, idx]
    ft = jnp.einsum("bfn,cn->bcf", frames, jnp.asarray(FWD_BASIS))
    real, imag = ft[:, :CUTOFF, :], ft[:, CUTOFF:, :]
    mag = jnp.sqrt(real ** 2 + imag ** 2)
    ph = jnp.arctan2(imag, real)
    recomb = jnp.concatenate([mag * jnp.cos(ph), mag * jnp.sin(ph)], axis=1)     # (B, 2c, nf)
    contrib = jnp.einsum("bcf,cn->bfn", recomb, jnp.asarray(INV_BASIS))
    n_total = FILTER_LENGTH + HOP_LENGTH * (nf - 1)
    y = jnp.zeros((B, n_total), jnp.float32)
    for t in range(nf):
        y = y.at[:, t * HOP_LENGTH:t * HOP_LENGTH + FILTER_LENGTH].add(contrib[:, t])
    wsum = _window_sumsquare(nf)
    tiny = np.finfo(np.float32).tiny
    wnorm = np.where(wsum > tiny, 1.0 / wsum, 1.0).astype(np.float32) * np.float32(SCALE)
    y = y * jnp.asarray(wnorm)[None, :]
    return y[:, PAD_AMOUNT:PAD_AMOUNT + num_samples], mag, ph


if __name__ == "__main__":
    key = jax.random.PRNGKey(0)
    x = jax.random.normal(key, (2, 64), dtype=jnp.float32)   # (batch, num_samples)

    recon, magnitude, phase = stft_forward(x)
    jax.block_until_ready(recon)

    ref_recon, ref_mag, _ = reference_forward(x)
    np.testing.assert_allclose(np.asarray(recon), np.asarray(ref_recon), rtol=1e-3, atol=1e-3)
    np.testing.assert_allclose(np.asarray(magnitude), np.asarray(ref_mag), rtol=1e-3, atol=1e-3)

    nf = (64 + 2 * PAD_AMOUNT - FILTER_LENGTH) // HOP_LENGTH + 1
    assert recon.shape == x.shape and recon.dtype == jnp.float32
    assert magnitude.shape == (2, CUTOFF, nf) and phase.shape == (2, CUTOFF, nf)

    print("KERNEL_OK")
</pallas_src>

<mosaic_0001>
module attributes {stable_mosaic.version = 11 : i64} {
  func.func @_stft_fused_kernel(%arg0: i32, %arg1: memref<1x20x4xf32, #tpu.memory_space<vmem>>, %arg2: memref<18x16xf32, #tpu.memory_space<vmem>>, %arg3: memref<16x18xf32, #tpu.memory_space<vmem>>, %arg4: memref<4x20xf32, #tpu.memory_space<vmem>>, %arg5: memref<1x18x17xf32, #tpu.memory_space<vmem>>, %arg6: memref<1x9x17xf32, #tpu.memory_space<vmem>>, %arg7: memref<1x4x20xf32, #tpu.memory_space<vmem>>) attributes {dimension_semantics = [#tpu.dimension_semantics<parallel>], iteration_bounds = array<i64: 2>, scalar_prefetch = 0 : i64, scratch_operands = 0 : i64, tpu.core_type = #tpu.core_type<tc>, window_params = [{transform_indices = @transform_0, window_bounds = array<i64: 1, 20, 4>}, {pipeline_mode = #tpu.pipeline_mode<synchronous>, transform_indices = @transform_1, window_bounds = array<i64: 18, 16>}, {pipeline_mode = #tpu.pipeline_mode<synchronous>, transform_indices = @transform_2, window_bounds = array<i64: 16, 18>}, {pipeline_mode = #tpu.pipeline_mode<synchronous>, transform_indices = @transform_3, window_bounds = array<i64: 4, 20>}, {transform_indices = @transform_4, window_bounds = array<i64: 1, 18, 17>}, {transform_indices = @transform_5, window_bounds = array<i64: 1, 9, 17>}, {transform_indices = @transform_6, window_bounds = array<i64: 1, 4, 20>}]} {
    %c0 = arith.constant 0 : index
    %c0_0 = arith.constant 0 : index
    %c0_1 = arith.constant 0 : index
    %0 = vector.load %arg1[%c0, %c0_0, %c0_1] : memref<1x20x4xf32, #tpu.memory_space<vmem>>, vector<1x20x4xf32>
    %1 = vector.shape_cast %0 : vector<1x20x4xf32> to vector<20x4xf32>
    %2 = vector.extract_strided_slice %1 {offsets = [0, 0], sizes = [17, 4], strides = [1, 1]} : vector<20x4xf32> to vector<17x4xf32>
    %3 = vector.extract_strided_slice %1 {offsets = [1, 0], sizes = [17, 4], strides = [1, 1]} : vector<20x4xf32> to vector<17x4xf32>
    %4 = vector.extract_strided_slice %1 {offsets = [2, 0], sizes = [17, 4], strides = [1, 1]} : vector<20x4xf32> to vector<17x4xf32>
    %5 = vector.extract_strided_slice %1 {offsets = [3, 0], sizes = [17, 4], strides = [1, 1]} : vector<20x4xf32> to vector<17x4xf32>
    %6 = tpu.concatenate %2, %3, %4, %5 in 1 : vector<17x4xf32>, vector<17x4xf32>, vector<17x4xf32>, vector<17x4xf32> -> vector<17x16xf32>
    %c0_2 = arith.constant 0 : index
    %c0_3 = arith.constant 0 : index
    %7 = vector.load %arg2[%c0_2, %c0_3] : memref<18x16xf32, #tpu.memory_space<vmem>>, vector<18x16xf32>
    %8 = tpu.transpose %6, [1, 0] : vector<17x16xf32> -> vector<16x17xf32>
    %cst = arith.constant dense<0.000000e+00> : vector<18x17xf32>
    %9 = tpu.matmul %7, %8, %cst {dimension_numbers = #tpu.dot_dimension_numbers<[1], [0], [0], [1], [0, 0, 1, 1], [], []>} : vector<18x16xf32>, vector<16x17xf32>, vector<18x17xf32> -> vector<18x17xf32>
    %c0_4 = arith.constant 0 : index
    %c0_5 = arith.constant 0 : index
    %c0_6 = arith.constant 0 : index
    %10 = vector.load %arg5[%c0_4, %c0_5, %c0_6] : memref<1x18x17xf32, #tpu.memory_space<vmem>>, vector<1x18x17xf32>
    %11 = vector.shape_cast %10 : vector<1x18x17xf32> to vector<18x17xf32>
    %12 = vector.shape_cast %9 : vector<18x17xf32> to vector<1x18x17xf32>
    tpu.vector_store %arg5[%c0_4, %c0_5, %c0_6], %12 {strides = array<i32>} : memref<1x18x17xf32, #tpu.memory_space<vmem>>, vector<1x18x17xf32>,
    %13 = vector.extract_strided_slice %9 {offsets = [0, 0], sizes = [9, 17], strides = [1, 1]} : vector<18x17xf32> to vector<9x17xf32>
    %14 = vector.extract_strided_slice %9 {offsets = [9, 0], sizes = [9, 17], strides = [1, 1]} : vector<18x17xf32> to vector<9x17xf32>
    %15 = arith.mulf %13, %13 : vector<9x17xf32>
    %16 = arith.mulf %14, %14 : vector<9x17xf32>
    %17 = arith.addf %15, %16 : vector<9x17xf32>
    %18 = math.sqrt %17 : vector<9x17xf32>
    %c0_7 = arith.constant 0 : index
    %c0_8 = arith.constant 0 : index
    %c0_9 = arith.constant 0 : index
    %19 = vector.load %arg6[%c0_7, %c0_8, %c0_9] : memref<1x9x17xf32, #tpu.memory_space<vmem>>, vector<1x9x17xf32>
    %20 = vector.shape_cast %19 : vector<1x9x17xf32> to vector<9x17xf32>
    %21 = vector.shape_cast %18 : vector<9x17xf32> to vector<1x9x17xf32>
    tpu.vector_store %arg6[%c0_7, %c0_8, %c0_9], %21 {strides = array<i32>} : memref<1x9x17xf32, #tpu.memory_space<vmem>>, vector<1x9x17xf32>,
    %c0_10 = arith.constant 0 : index
    %c0_11 = arith.constant 0 : index
    %22 = vector.load %arg3[%c0_10, %c0_11] : memref<16x18xf32, #tpu.memory_space<vmem>>, vector<16x18xf32>
    %cst_12 = arith.constant dense<0.000000e+00> : vector<16x17xf32>
    %23 = tpu.matmul %22, %9, %cst_12 {dimension_numbers = #tpu.dot_dimension_numbers<[1], [0], [0], [1], [0, 0, 1, 1], [], []>} : vector<16x18xf32>, vector<18x17xf32>, vector<16x17xf32> -> vector<16x17xf32>
    %cst_13 = arith.constant 0.000000e+00 : f32
    %24 = vector.broadcast %cst_13 : f32 to vector<4x20xf32>
    %25 = vector.extract_strided_slice %23 {offsets = [0, 0], sizes = [4, 17], strides = [1, 1]} : vector<16x17xf32> to vector<4x17xf32>
    %cst_14 = arith.constant 0.000000e+00 : f32
    %26 = vector.broadcast %cst_14 : f32 to vector<4x3xf32>
    %27 = tpu.concatenate %25, %26 in 1 : vector<4x17xf32>, vector<4x3xf32> -> vector<4x20xf32>
    %28 = arith.addf %24, %27 : vector<4x20xf32>
    %29 = vector.extract_strided_slice %23 {offsets = [4, 0], sizes = [4, 17], strides = [1, 1]} : vector<16x17xf32> to vector<4x17xf32>
    %cst_15 = arith.constant 0.000000e+00 : f32
    %30 = vector.broadcast %cst_15 : f32 to vector<4x1xf32>
    %cst_16 = arith.constant 0.000000e+00 : f32
    %31 = vector.broadcast %cst_16 : f32 to vector<4x2xf32>
    %32 = tpu.concatenate %30, %29, %31 in 1 : vector<4x1xf32>, vector<4x17xf32>, vector<4x2xf32> -> vector<4x20xf32>
    %33 = arith.addf %28, %32 : vector<4x20xf32>
    %34 = vector.extract_strided_slice %23 {offsets = [8, 0], sizes = [4, 17], strides = [1, 1]} : vector<16x17xf32> to vector<4x17xf32>
    %cst_17 = arith.constant 0.000000e+00 : f32
    %35 = vector.broadcast %cst_17 : f32 to vector<4x2xf32>
    %cst_18 = arith.constant 0.000000e+00 : f32
    %36 = vector.broadcast %cst_18 : f32 to vector<4x1xf32>
    %37 = tpu.concatenate %35, %34, %36 in 1 : vector<4x2xf32>, vector<4x17xf32>, vector<4x1xf32> -> vector<4x20xf32>
    %38 = arith.addf %33, %37 : vector<4x20xf32>
    %39 = vector.extract_strided_slice %23 {offsets = [12, 0], sizes = [4, 17], strides = [1, 1]} : vector<16x17xf32> to vector<4x17xf32>
    %cst_19 = arith.constant 0.000000e+00 : f32
    %40 = vector.broadcast %cst_19 : f32 to vector<4x3xf32>
    %41 = tpu.concatenate %40, %39 in 1 : vector<4x3xf32>, vector<4x17xf32> -> vector<4x20xf32>
    %42 = arith.addf %38, %41 : vector<4x20xf32>
    %c0_20 = arith.constant 0 : index
    %c0_21 = arith.constant 0 : index
    %43 = vector.load %arg4[%c0_20, %c0_21] : memref<4x20xf32, #tpu.memory_space<vmem>>, vector<4x20xf32>
    %44 = arith.mulf %42, %43 : vector<4x20xf32>
    %c0_22 = arith.constant 0 : index
    %c0_23 = arith.constant 0 : index
    %c0_24 = arith.constant 0 : index
    %45 = vector.load %arg7[%c0_22, %c0_23, %c0_24] : memref<1x4x20xf32, #tpu.memory_space<vmem>>, vector<1x4x20xf32>
    %46 = vector.shape_cast %45 : vector<1x4x20xf32> to vector<4x20xf32>
    %47 = vector.shape_cast %44 : vector<4x20xf32> to vector<1x4x20xf32>
    tpu.vector_store %arg7[%c0_22, %c0_23, %c0_24], %47 {strides = array<i32>} : memref<1x4x20xf32, #tpu.memory_space<vmem>>, vector<1x4x20xf32>,
    return
  }
  func.func @transform_0(%arg0: i32) -> (i32, i32, i32) {
    %c0_i32 = arith.constant 0 : i32
    %c0_i32_0 = arith.constant 0 : i32
    %c0_i32_1 = arith.constant 0 : i32
    return %arg0, %c0_i32, %c0_i32_0 : i32, i32, i32
  }
  func.func @transform_1(%arg0: i32) -> (i32, i32) {
    %c0_i32 = arith.constant 0 : i32
    %c0_i32_0 = arith.constant 0 : i32
    %c0_i32_1 = arith.constant 0 : i32
    return %c0_i32, %c0_i32_0 : i32, i32
  }
  func.func @transform_2(%arg0: i32) -> (i32, i32) {
    %c0_i32 = arith.constant 0 : i32
    %c0_i32_0 = arith.constant 0 : i32
    %c0_i32_1 = arith.constant 0 : i32
    return %c0_i32, %c0_i32_0 : i32, i32
  }
  func.func @transform_3(%arg0: i32) -> (i32, i32) {
    %c0_i32 = arith.constant 0 : i32
    %c0_i32_0 = arith.constant 0 : i32
    %c0_i32_1 = arith.constant 0 : i32
    return %c0_i32, %c0_i32_0 : i32, i32
  }
  func.func @transform_4(%arg0: i32) -> (i32, i32, i32) {
    %c0_i32 = arith.constant 0 : i32
    %c0_i32_0 = arith.constant 0 : i32
    %c0_i32_1 = arith.constant 0 : i32
    return %arg0, %c0_i32, %c0_i32_0 : i32, i32, i32
  }
  func.func @transform_5(%arg0: i32) -> (i32, i32, i32) {
    %c0_i32 = arith.constant 0 : i32
    %c0_i32_0 = arith.constant 0 : i32
    %c0_i32_1 = arith.constant 0 : i32
    return %arg0, %c0_i32, %c0_i32_0 : i32, i32, i32
  }
  func.func @transform_6(%arg0: i32) -> (i32, i32, i32) {
    %c0_i32 = arith.constant 0 : i32
    %c0_i32_0 = arith.constant 0 : i32
    %c0_i32_1 = arith.constant 0 : i32
    return %arg0, %c0_i32, %c0_i32_0 : i32, i32, i32
  }
}

</mosaic_0001>

<bundles_post_ra>
// kernel: stft_forward.1
= control target key start
LH: loop header
LB: loop body
LE: loop exit
PB: predicated region body
PF: predicated region fallthrough
CT: control target
= control target key end

     0   :  { %s866_s21 = smov 0   ;;  %s946_s0 = inlined_call_operand.vmem [shape: f32[2,20,4], index: 0, kind: input, shape index: {}]   ;;  %s947_s1 = inlined_call_operand.vmem [shape: f32[18,16], index: 1, kind: input, shape index: {}]   ;;  %s948_s2 = inlined_call_operand.vmem [shape: f32[16,18], index: 2, kind: input, shape index: {}]   ;;  %s949_s3 = inlined_call_operand.vmem [shape: f32[4,20], index: 3, kind: input, shape index: {}]   ;;  %s950_s4 = inlined_call_operand.vmem [shape: f32[2,18,17], index: 4, kind: output, shape index: {0}]   ;;  %s951_s5 = inlined_call_operand.vmem [shape: f32[2,9,17], index: 5, kind: output, shape index: {1}]   ;;  %s952_s6 = inlined_call_operand.vmem [shape: f32[2,4,20], index: 6, kind: output, shape index: {2}]  }
   0x1 LB: > { %s712_s22 = sadd.s32 4294967295, %s820_s21   ;;  %p716_p0 = scmp.ge.s32.totalorder %s820_s21, 1  ;;  %s820_s21 = sphi %s866_s21, %s17_s21  }
   0x2   : > { %p217_p1 = scmp.lt.s32.totalorder %s820_s21, 3 }
   0x4   : > { %p218_p2 = pnand %p716_p0, %p217_p1 }
   0x5   : > { %p256_p3 = scmp.lt.s32.totalorder (!%p218_p2), %s712_s22, 1  ;;  %v822_v0 = vmov (!%p218_p2), 0.0|0.0   ;;  %vm281_vm0 = vcmask (!%p218_p2), 1046528   ;;  %vm296_vm1 = vcmask (!%p218_p2), 1045504   ;;  %vm311_vm2 = vcmask (!%p218_p2), 1044480   ;;  %s823_s27 = smov (!%p218_p2), 4  }
   0x6   : > { %221 = sbr.rel (%p218_p2) target bundleno = 724 (0x2d4), region = 36  ;;  %769 = vmatprep.subr.bf16.mxu0 (!%p218_p2), %v822_v0  ;;  %s824_s28 = smov (!%p218_p2), 12   ;;  %vm826_vm3 = vmmov (!%p218_p2), 0   ;;  %v827_v22 = vmov (!%p218_p2), 0.0   ;;  %vm326_vm4 = vcmask (!%p218_p2), 31744   ;;  %vm330_vm5 = vcmask (!%p218_p2), 64512  }
   0x7   : > { %s825_s29 = smov (!%p218_p2), 8   ;;  %751 = vmatprep.mubr.msk.f32.mxu0 (!%p218_p2), %vm826_vm3, %v827_v22  ;;  %vm334_vm6 = vcmask (!%p218_p2), 97280   ;;  %vm341_vm7 = vcmask (!%p218_p2), 130048   ;;  %v338_v45 = vld [vmem:[%s947_s1] sm:$0xff] (!%p218_p2)  ;;  %v339_v46 = vld [vmem:[%s947_s1 + $0x8] sm:$0xff] (!%p218_p2)  ;;  %vm476_vm9 = vcmask (!%p218_p2), 146432  }
   0x8   : > { %vm771_vm8 = vmpackc.low (!%p218_p2), %vm341_vm7, %vm341_vm7  ;;  %v340_v47 = vld [vmem:[%s947_s1 + $0x10] sm:$0x3] (!%p218_p2)  ;;  %v474_v48 = vld [vmem:[%s948_s2] sm:$0xff] (!%p218_p2)  ;;  %vm440_vm10 = vcmask (!%p218_p2), 138240   ;;  %vm443_vm11 = vcmask (!%p218_p2), 132096   ;;  %vm483_vm12 = vcmask (!%p218_p2), 1041408  }
   0x9   : > { %766 = vmatprep.mubr.msk.f32.mxu1 (!%p218_p2), %vm476_vm9, %v474_v48  ;;  %v475_v58 = vld [vmem:[%s948_s2 + $0x8] sm:$0xff] (!%p218_p2)  ;;  %vm472_vm14 = vcmask (!%p218_p2), 131072   ;;  %s828_s25 = smov (!%p218_p2), 2  }
   0xd   : > { %s954_s22 = smov (!%p256_p3, %s712_s22), 1 }
   0xe   : > { %s777_s23 = smul.u32 24, %s954_s22  ;;  %s733_s19 = sshll.u32 %s954_s22, 4 }
   0xf   : > { %s270_s24 = scalar_lea.vmem %s951_s5, %s733_s19 }
  0x10   : > { %s260_s26 = scalar_lea.vmem %s946_s0, %s777_s23  ;;  %s265_s16 = scalar_lea.vmem %s950_s4, %s777_s23 }
  0x11   : > { %v275_v1 = vld [vmem:[%s260_s26] sm:$0xff]  ;;  %v276_v2 = vld [vmem:[%s260_s26 + $0x8] sm:$0xff]  ;;  %v277_v3 = vld [vmem:[%s260_s26 + $0x10] sm:$0xf]  ;;  %s829_s26 = smov 1  }
  0x12   : > { %v282_v4 = vrot.slane %v275_v1, 1  ;;  %v283_v5 = vrot.slane %v276_v2, 1  ;;  %v285_v6 = vrot.slane %v277_v3, 1  ;;  %v297_v7 = vrot.slane %v275_v1, 2 }
  0x13   : > { %v298_v8 = vrot.slane %v276_v2, 2  ;;  %v300_v9 = vrot.slane %v277_v3, 2  ;;  %v312_v10 = vrot.slane %v275_v1, 3  ;;  %v313_v11 = vrot.slane %v276_v2, 3 }
  0x14   : > { %v284_v12 = vsel %vm281_vm0, %v282_v4, %v283_v5  ;;  %v286_v13 = vsel %vm281_vm0, %v283_v5, %v285_v6  ;;  %v315_v14 = vrot.slane %v277_v3, 3 }
  0x15   : > { %v795_v15 = vpack.i.bf16 %v286_v13, %v284_v12  ;;  %v299_v16 = vsel %vm296_vm1, %v297_v7, %v298_v8  ;;  %v301_v17 = vsel %vm296_vm1, %v298_v8, %v300_v9  ;;  %v314_v18 = vsel %vm311_vm2, %v312_v10, %v313_v11 }
  0x16   : > { %v316_v19 = vsel %vm311_vm2, %v313_v11, %v315_v14  ;;  %v800_v20 = vpack.i.bf16 %v301_v17, %v299_v16  ;;  %vm577_vm2 = vcmask 15360  }
  0x17   : > { %796 = vrot.lane.b32.xlu0 %v795_v15, %s823_s27  ;;  %v805_v21 = vpack.i.bf16 %v316_v19, %v314_v18 }
  0x19   : > { %806 = vrot.lane.b32.xlu1 %v805_v21, %s824_s28 }
  0x1b   : > { %801 = vrot.lane.b32.xlu0 %v800_v20, %s825_s29 }
  0x1d   : > { %291 = vrot.lane.b32.xlu1 %v285_v6, %s823_s27  ;;  %s830_s27 = smov 3  }
  0x1f   : > { %306 = vrot.lane.b32.xlu0 %v300_v9, %s825_s29 }
  0x21   : > { %321 = vrot.lane.b32.xlu1 %v315_v14, %s824_s28  ;;  %s721_s28 = sshll.u32 %s954_s22, 2 }
  0x22   : > { %s274_s9 = scalar_lea.vmem %s952_s6, %s721_s28 }
  0x89   : > { %v797_v23 = vpop.permute.xlu0 %796 }
  0x8a   : > { %v799_v24 = vunpack.i.h.bf16 %v797_v23  ;;  %v798_v25 = vunpack.i.l.bf16 %v797_v23 }
  0x8b   : > { %v807_v26 = vpop.permute.xlu1 %806 }
  0x8c   : > { %v809_v28 = vunpack.i.h.bf16 %v807_v26  ;;  %v808_v29 = vunpack.i.l.bf16 %v807_v26  ;;  %v327_v32 = vsel %vm326_vm4, %v275_v1, %v798_v25  ;;  %v328_v33 = vsel %vm326_vm4, %v276_v2, %v799_v24  ;;  %v589_v26 = vld [vmem:[%s949_s3] sm:$0xf] }
  0x8d   : > { %v802_v27 = vpop.permute.xlu0 %801 }
  0x8e   : > { %v804_v30 = vunpack.i.h.bf16 %v802_v27  ;;  %v803_v31 = vunpack.i.l.bf16 %v802_v27 }
  0x8f   : > { %v292_v38 = vpop.permute.xlu1 %291 }
  0x90   : > { %v331_v34 = vsel %vm330_vm5, %v327_v32, %v803_v31  ;;  %v332_v35 = vsel %vm330_vm5, %v328_v33, %v804_v30  ;;  %v329_v40 = vsel %vm326_vm4, %v277_v3, %v292_v38  ;;  %vm579_vm4 = vcmask 154624  }
  0x91   : > { %v335_v36 = vsel %vm334_vm6, %v331_v34, %v808_v29  ;;  %v336_v37 = vsel %vm334_vm6, %v332_v35, %v809_v28  ;;  %v307_v41 = vpop.permute.xlu0 %306 }
  0x92   : > { %v770_v39 = vpack.c.bf16 %v336_v37, %v335_v36  ;;  %v333_v42 = vsel %vm330_vm5, %v329_v40, %v307_v41  ;;  %vm586_vm5 = vcmask 23552  }
  0x93   : > { %v322_v43 = vpop.permute.xlu1 %321 }
  0x94   : > { %772 = vmatpush3.bf16.xpose.msk.msra.mxu0 %vm771_vm8, %v770_v39  ;;  %v337_v44 = vsel %vm334_vm6, %v333_v42, %v322_v43  ;;  %vm591_vm6 = vcmask 158720  }
  0x95   : > { %749 = vmatprep.subr.mxu0 %v827_v22 }
  0x9c   : > { %750 = vmatpush3.xpose.msk.msra.mxu0 %vm341_vm7, %v337_v44 }
  0x9f   : > { %752 = vmatmul.mubr.msk.f32.vlgmr.msra.gmra.mrb[0].mxu0 %vm341_vm7, %v338_v45 }
  0xa0   : > { %754 = vmatprep.mubr.msk.f32.mxu0 %vm826_vm3, %v827_v22 }
  0xa3   : > { %755 = vmatmul.mubr.msk.f32.gmra.mrb[2].mxu0 %vm341_vm7, %v339_v46 }
  0xa4   : > { %757 = vmatprep.mubr.msk.f32.mxu0 %vm826_vm3, %v827_v22  ;;  %vm569_vm3 = vcmask 7168  }
  0xa7   : > { %758 = vmatmul.mubr.msk.f32.gmra.mrb[4].mxu0 %vm341_vm7, %v340_v47 }
 0x172   : > { %v426_v49 = vpop.f32.mrb[0].mxu0 }
 0x173   : > { %441 = vst.msk [vmem:[%s265_s16] sm:$0xff] %vm440_vm10, %v426_v49  ;;  %v753_v50 = vpop.f32.mrb[1].mxu0  ;;  %v445_v61 = vmul.f32 %v426_v49, %v426_v49 }
 0x176   : > { %v431_v51 = vpop.f32.mrb[2].mxu0 }
 0x177   : > { %442 = vst.msk [vmem:[%s265_s16 + $0x8] sm:$0xff] %vm440_vm10, %v431_v51  ;;  %v756_v52 = vpop.f32.mrb[3].mxu0  ;;  %v773_v53 = vpack.c.bf16 %v431_v51, %v426_v49  ;;  %v446_v54 = vmul.f32 %v431_v51, %v431_v51 }
 0x179   : > { %774 = vmatprep.subr.bf16.mxu1 %v773_v53  ;;  %v450_v59 = vrot.slane %v446_v54, 1 }
 0x17a   : > { %v436_v55 = vpop.f32.mrb[4].mxu0  ;;  %776 = vmatpush3.bf16.msra.mxu1 %v773_v53 }
 0x17b   : > { %444 = vst.msk [vmem:[%s265_s16 + $0x10] sm:$0x3] %vm443_vm11, %v436_v55  ;;  %v447_v56 = vmul.f32 %v436_v55, %v436_v55  ;;  %v759_v57 = vpop.f32.mrb[5].mxu0  ;;  %764 = vmatprep.subr.msk.mxu1 %vm483_vm12, %v436_v55 }
 0x17d   : > { %v451_v60 = vrot.slane %v447_v56, 1 }
 0x17e   : > { %765 = vmatpush3.msk.msra.mxu1 %vm483_vm12, %v436_v55 }
 0x17f   : > { %v452_v62 = vsel %vm281_vm0, %v450_v59, %v451_v60  ;;  %v456_v63 = vadd.f32 %v451_v60, %v446_v54  ;;  %767 = vmatmul.mubr.msk.f32.vlgmr.msra.gmra.mrb[0].mxu1 %vm476_vm9, %v475_v58 }
 0x180   : > { %v455_v0 = vadd.f32 %v452_v62, %v445_v61 }
 0x181   : > { %810 = vrsqrt.f32 %v456_v63  ;;  %vm466_vm13 = vcmp.eq.f32.partialorder %v456_v63, inf  ;;  %v469_v5 = vand.u32 2147483648, %v456_v63  ;;  %vm468_vm0 = vcmp.eq.f32.partialorder %v456_v63, 0.0 }
 0x182   : > { %812 = vrsqrt.f32 %v455_v0  ;;  %vm459_vm15 = vcmp.eq.f32.partialorder %v455_v0, inf  ;;  %v462_v6 = vand.u32 2147483648, %v455_v0  ;;  %vm461_vm1 = vcmp.eq.f32.partialorder %v455_v0, 0.0 }
 0x18b   : > { %v811_v1 = vpop.eup %810 }
 0x18c   : > { %v813_v2 = vpop.eup %812  ;;  %v465_v3 = vmul.f32 %v811_v1, %v456_v63 }
 0x18d   : > { %v458_v4 = vmul.f32 %v813_v2, %v455_v0 }
 0x18e   : > { %v467_v7 = vsel %vm466_vm13, %v456_v63, %v465_v3 }
 0x18f   : > { %v460_v8 = vsel %vm459_vm15, %v455_v0, %v458_v4  ;;  %v470_v9 = vsel %vm468_vm0, %v469_v5, %v467_v7 }
 0x190   : > { %v463_v10 = vsel %vm461_vm1, %v462_v6, %v460_v8  ;;  %473 = vst.msk [vmem:[%s270_s24 + $0x8] sm:$0x1] %vm472_vm14, %v470_v9 }
 0x191   : > { %471 = vst.msk [vmem:[%s270_s24] sm:$0xff] %vm440_vm10, %v463_v10 }
 0x252   : > { %v768_v11 = vpop.f32.mrb[0].mxu1 }
 0x253   : > { %574 = vrot.lane.b32.xlu1 %v768_v11, %s828_s25  ;;  %v553_v12 = vpop.f32.mrb[1].mxu1  ;;  %v582_v14 = vrot.slane %v768_v11, 4 }
 0x254   : > { %v565_v13 = vrot.slane %v553_v12, 4  ;;  %v562_v19 = vsel %vm440_vm10, %v553_v12, 0.0 }
 0x256   : > { %566 = vrot.lane.b32.xlu0 %v565_v13, %s829_s26 }
 0x25a   : > { %583 = vrot.lane.b32.xlu0 %v582_v14, %s830_s27 }
 0x2c5   : > { %v575_v15 = vpop.permute.xlu1 %574 }
 0x2c6   : > { %v578_v17 = vsel %vm577_vm2, 0.0, %v575_v15 }
 0x2c7   : > { %v580_v22 = vsel %vm579_vm4, %v578_v17, 0.0 }
 0x2c8   : > { %v567_v16 = vpop.permute.xlu0 %566 }
 0x2c9   : > { %v570_v18 = vsel %vm569_vm3, 0.0, %v567_v16 }
 0x2ca   : > { %v571_v20 = vsel %vm476_vm9, %v570_v18, 0.0 }
 0x2cb   : > { %v572_v21 = vadd.f32 %v571_v20, %v562_v19 }
 0x2cc   : > { %v584_v23 = vpop.permute.xlu0 %583 }
 0x2cd   : > { %v581_v24 = vadd.f32 %v580_v22, %v572_v21  ;;  %v587_v25 = vsel %vm586_vm5, 0.0, %v584_v23 }
 0x2cf   : > { %v588_v27 = vadd.f32 %v587_v25, %v581_v24 }
 0x2d1   : > { %v590_v28 = vmul.f32 %v589_v26, %v588_v27 }
 0x2d3   : > { %592 = vst.msk [vmem:[%s274_s9] sm:$0xf] %vm591_vm6, %v590_v28 }
 0x2d4 PF: > { %s17_s21 = sadd.s32 1, %s820_s21  }
 0x2d5   : > { %p14_p4 = scmp.ge.s32.totalorder %s17_s21, 4  }
 0x2d7   :  { %16 = sbr.rel (!%p14_p4) target bundleno = 1 (0x1), region = 90 }

</bundles_post_ra>
